<compile_context>
chip_gen: v5e
topology: v5e:2x2
jax: 0.10.0
libtpu: 0.0.40
codegen_flags: <defaults>
</compile_context>

<pallas_src>
import math
from functools import partial

import jax
import jax.numpy as jnp
from jax.experimental import pallas as pl
from jax.experimental.pallas import tpu as pltpu

VERY_BIG_NUMBER = 1e30
VERY_NEGATIVE_NUMBER = -VERY_BIG_NUMBER


def _cdiv(a, b):
    return -(-a // b)


def _round_up(a, b):
    return _cdiv(a, b) * b


def _tri_linear_logits_kernel(*refs, k, has_mask):
    # refs (has_mask): h, u, mask, wseg, bias, out
    #      (no mask) : h, u,       wseg, bias, out
    if has_mask:
        h_ref, u_ref, mask_ref, w_ref, b_ref, out_ref = refs
    else:
        h_ref, u_ref, w_ref, b_ref, out_ref = refs
        mask_ref = None

    h = h_ref[...]                        # (tmf, Dk), input/compute dtype
    u = u_ref[...]
    hu = h * u                            # the only per-element VPU work

    # Weighted reduction on the MXU.  wseg[c] is (R, Dk) block-diagonal: row j
    # holds w_c in lane segment [j*D, (j+1)*D), so result row j / column r is
    # the w_c-contribution of original row (tile_row r, fold slot j).  The tmf
    # row tile lands on LANES -> lane-dense output.
    dn = (((1,), (1,)), ((), ()))         # contract the lane dim of both sides
    s = jax.lax.dot_general(w_ref[0], h, dn, preferred_element_type=jnp.float32)
    s = s + jax.lax.dot_general(w_ref[1], u, dn, preferred_element_type=jnp.float32)
    s = s + jax.lax.dot_general(w_ref[2], hu, dn, preferred_element_type=jnp.float32)
    # s: (R, tmf) f32; rows [0, k) hold the k logits per tile column.
    row = s[:k, :] + b_ref[0]             # (k, tmf)

    if has_mask:                          # exp_mask: logits + (1 - mask) * (-1e30)
        row = row + (1.0 - mask_ref[0]) * VERY_NEGATIVE_NUMBER

    out_ref[...] = row[None]


def get_logits_tri_linear(h, u, mask, weight, bias):
    """Pallas implementation of GetLogits.forward with function='tri_linear'.

    h, u   : [B, S, D]  (float32 or bfloat16)
    mask   : [B, S] or None (1 = keep, 0 = mask out)
    weight : [1, 3*D]   (nn.Linear weight, columns = [w1 | w2 | w3])
    bias   : [1]        (nn.Linear bias)
    returns: [B, S] float32 logits
    """
    B, S, D = h.shape
    assert u.shape == (B, S, D)
    assert weight.shape == (1, 3 * D)
    N = B * S

    compute_dtype = jnp.promote_types(h.dtype, u.dtype)
    if not jnp.issubdtype(compute_dtype, jnp.floating):
        compute_dtype = jnp.float32
    isz = jnp.dtype(compute_dtype).itemsize

    # ---- row folding for small D (lane density) ------------------------------
    kmax = 128 // D if (D < 128 and 128 % D == 0) else 1
    k = math.gcd(N, kmax)                 # largest power-of-two fold that keeps the reshape free
    Nf, Dk = N // k, k * D
    h2 = h.reshape(Nf, Dk).astype(compute_dtype)   # free reshapes, NO padding of h/u
    u2 = u.reshape(Nf, Dk).astype(compute_dtype)

    # ---- segmented weight (resident in VMEM), bias scalar in SMEM ------------
    R = max(8, k)
    w3 = weight.reshape(3, D).astype(jnp.float32)                   # rows w1, w2, w3
    seg = (jnp.arange(Dk) // D)[None, :]                            # (1, Dk)
    sel = (jnp.arange(R)[:, None] == seg).astype(jnp.float32)       # (R, Dk) block-diagonal ones
    wseg = (sel[None, :, :] * jnp.tile(w3, (1, k))[:, None, :]).astype(compute_dtype)
    b = bias.reshape(1).astype(jnp.float32)

    # ---- tile size / scoped-VMEM budget per chip generation ------------------
    try:
        vmem_cap = int(pltpu.get_tpu_info().vmem_capacity_bytes)
    except Exception:
        vmem_cap = 64 * 1024 * 1024       # conservative fallback (v7x per-core VMEM)
    vmem_budget = min(vmem_cap * 3 // 4, vmem_cap - (16 << 20))     # ~48 MiB v7x / ~96 MiB v5e,v6e
    vmem_budget = max(vmem_budget, 16 << 20)

    # Per-row bytes: h,u double-buffered tiles + the hu intermediate + slack for
    # lowering copies + mask/out double buffers.  (No f32 (tm, D) acc anymore.)
    per_row = Dk * isz * (2 * 2 + 2) + Dk * 4 + 16 * k
    fixed = 2 * 3 * R * Dk * 4 + (2 << 20)          # resident weight + internal scratch headroom
    tmf = max(128, ((vmem_budget - fixed) // per_row) // 128 * 128)
    tmf = min(tmf, 2048)                            # per-step overhead already amortized
    tmf = min(tmf, _round_up(Nf, 128))              # don't exceed the problem
    if Nf >= 256:                                   # keep >= 2 grid steps so v7x's 2 TCs both work
        tmf = min(tmf, _round_up(_cdiv(Nf, 2), 128))
    G = _cdiv(Nf, tmf)

    est_vmem = fixed + per_row * tmf
    vmem_limit = vmem_budget if est_vmem > (12 << 20) else None

    # ---- operands / specs -----------------------------------------------------
    has_mask = mask is not None
    operands = [h2, u2]
    in_specs = [pl.BlockSpec((tmf, Dk), lambda i: (i, 0)),
                pl.BlockSpec((tmf, Dk), lambda i: (i, 0))]
    if has_mask:
        # Only the tiny (N,) mask is padded; laid out lane-dense as (G, k, tmf)
        # so mask[g, j, r] matches original row (g*tmf + r)*k + j.
        m1 = mask.reshape(N).astype(jnp.float32)
        m1 = jnp.pad(m1, (0, G * tmf * k - N))
        m3 = m1.reshape(G, tmf, k).transpose(0, 2, 1)
        operands.append(m3)
        in_specs.append(pl.BlockSpec((1, k, tmf), lambda i: (i, 0, 0)))
    operands += [wseg, b]
    in_specs += [pl.BlockSpec((3, R, Dk), lambda i: (0, 0, 0)),   # resident segmented weight
                 pl.BlockSpec(memory_space=pltpu.SMEM)]           # bias scalar

    out = pl.pallas_call(
        partial(_tri_linear_logits_kernel, k=k, has_mask=has_mask),
        out_shape=jax.ShapeDtypeStruct((G, k, tmf), jnp.float32),
        grid_spec=pltpu.PrefetchScalarGridSpec(
            num_scalar_prefetch=0,
            grid=(G,),
            in_specs=in_specs,
            out_specs=pl.BlockSpec((1, k, tmf), lambda i: (i, 0, 0)),
        ),
        compiler_params=pltpu.CompilerParams(
            dimension_semantics=("parallel",),
            vmem_limit_bytes=vmem_limit),
    )(*operands)

    # (G, k, tmf) -> original row-major order; ragged-tile garbage is sliced off.
    flat = out.transpose(0, 2, 1).reshape(G * tmf * k)
    return flat[:N].reshape(B, S)


def _reference(h, u, mask, weight, bias):
    # Pure-JAX mirror of the PyTorch forward (f32, highest precision).
    B, S, D = h.shape
    hf, uf = h.astype(jnp.float32), u.astype(jnp.float32)
    flat = jnp.concatenate([hf.reshape(-1, D), uf.reshape(-1, D),
                            (hf * uf).reshape(-1, D)], axis=1)
    ref = (jnp.dot(flat, weight.astype(jnp.float32).T,
                   precision=jax.lax.Precision.HIGHEST)
           + bias.astype(jnp.float32)).reshape(B, S)
    if mask is not None:
        ref = ref + (1.0 - mask.astype(jnp.float32)) * VERY_NEGATIVE_NUMBER
    return ref


if __name__ == "__main__":
    key = jax.random.PRNGKey(0)
    kh, ku, km, kw, kb, kh2, ku2, kw2, kb2 = jax.random.split(key, 9)

    # --- config 1: small D (row folding k=4), ragged tile, f32, with mask -----
    B, S, D = 3, 100, 32                  # N = 300 -> Nf = 75, Dk = 128
    in_sz = 3 * D
    bound = 1.0 / (in_sz ** 0.5)
    h = jax.random.normal(kh, (B, S, D), jnp.float32)
    u = jax.random.normal(ku, (B, S, D), jnp.float32)
    mask = (jax.random.uniform(km, (B, S)) > 0.3).astype(jnp.float32)
    weight = jax.random.uniform(kw, (1, in_sz), jnp.float32, -bound, bound)
    bias = jax.random.uniform(kb, (1,), jnp.float32, -bound, bound)

    logits = jax.block_until_ready(get_logits_tri_linear(h, u, mask, weight, bias))
    ref = _reference(h, u, mask, weight, bias)
    assert jnp.allclose(logits, ref, rtol=1e-3, atol=2e-2), (
        float(jnp.max(jnp.abs(logits - ref))))

    # --- config 2: D > 128 (no folding), bf16, no mask, 2 grid steps ----------
    B2, S2, D2 = 2, 192, 160              # N = 384 -> tmf = 256, G = 2
    in_sz2 = 3 * D2
    bound2 = 1.0 / (in_sz2 ** 0.5)
    hb = jax.random.normal(kh2, (B2, S2, D2), jnp.float32).astype(jnp.bfloat16)
    ub = jax.random.normal(ku2, (B2, S2, D2), jnp.float32).astype(jnp.bfloat16)
    weight2 = jax.random.uniform(kw2, (1, in_sz2), jnp.float32, -bound2, bound2)
    bias2 = jax.random.uniform(kb2, (1,), jnp.float32, -bound2, bound2)

    logits2 = jax.block_until_ready(get_logits_tri_linear(hb, ub, None, weight2, bias2))
    ref2 = _reference(hb, ub, None, weight2, bias2)
    # bf16 products / bf16 weight cast before the f32 MXU accumulate -> looser tol.
    assert jnp.allclose(logits2, ref2, rtol=2e-2, atol=5e-2), (
        float(jnp.max(jnp.abs(logits2 - ref2))))

    print("KERNEL_OK")
</pallas_src>

<mosaic_0001>
module attributes {stable_mosaic.version = 11 : i64} {
  func.func @_tri_linear_logits_kernel(%arg0: i32, %arg1: memref<128x128xf32, #tpu.memory_space<vmem>>, %arg2: memref<128x128xf32, #tpu.memory_space<vmem>>, %arg3: memref<1x4x128xf32, #tpu.memory_space<vmem>>, %arg4: memref<3x8x128xf32, #tpu.memory_space<vmem>>, %arg5: memref<1xf32, #tpu.memory_space<smem>>, %arg6: memref<1x4x128xf32, #tpu.memory_space<vmem>>) attributes {dimension_semantics = [#tpu.dimension_semantics<parallel>], iteration_bounds = array<i64: 1>, scalar_prefetch = 0 : i64, scratch_operands = 0 : i64, tpu.core_type = #tpu.core_type<tc>, window_params = [{transform_indices = @transform_0, window_bounds = array<i64: 128, 128>}, {transform_indices = @transform_1, window_bounds = array<i64: 128, 128>}, {transform_indices = @transform_2, window_bounds = array<i64: 1, 4, 128>}, {pipeline_mode = #tpu.pipeline_mode<synchronous>, transform_indices = @transform_3, window_bounds = array<i64: 3, 8, 128>}, {transform_indices = @transform_4, window_bounds = array<i64: 1>}, {transform_indices = @transform_5, window_bounds = array<i64: 1, 4, 128>}]} {
    %c0 = arith.constant 0 : index
    %c0_0 = arith.constant 0 : index
    %0 = vector.load %arg1[%c0, %c0_0] : memref<128x128xf32, #tpu.memory_space<vmem>>, vector<128x128xf32>
    %c0_1 = arith.constant 0 : index
    %c0_2 = arith.constant 0 : index
    %1 = vector.load %arg2[%c0_1, %c0_2] : memref<128x128xf32, #tpu.memory_space<vmem>>, vector<128x128xf32>
    %2 = arith.mulf %0, %1 : vector<128x128xf32>
    %c0_3 = arith.constant 0 : index
    %c0_4 = arith.constant 0 : index
    %c0_5 = arith.constant 0 : index
    %3 = vector.load %arg4[%c0_3, %c0_4, %c0_5] : memref<3x8x128xf32, #tpu.memory_space<vmem>>, vector<1x8x128xf32>
    %4 = vector.shape_cast %3 : vector<1x8x128xf32> to vector<8x128xf32>
    %cst = arith.constant dense<0.000000e+00> : vector<8x128xf32>
    %5 = tpu.matmul %4, %0, %cst {dimension_numbers = #tpu.dot_dimension_numbers<[1], [1], [0], [0], [0, 0, 1, 0], [], []>} : vector<8x128xf32>, vector<128x128xf32>, vector<8x128xf32> -> vector<8x128xf32>
    %c1 = arith.constant 1 : index
    %c0_6 = arith.constant 0 : index
    %c0_7 = arith.constant 0 : index
    %6 = vector.load %arg4[%c1, %c0_6, %c0_7] : memref<3x8x128xf32, #tpu.memory_space<vmem>>, vector<1x8x128xf32>
    %7 = vector.shape_cast %6 : vector<1x8x128xf32> to vector<8x128xf32>
    %cst_8 = arith.constant dense<0.000000e+00> : vector<8x128xf32>
    %8 = tpu.matmul %7, %1, %cst_8 {dimension_numbers = #tpu.dot_dimension_numbers<[1], [1], [0], [0], [0, 0, 1, 0], [], []>} : vector<8x128xf32>, vector<128x128xf32>, vector<8x128xf32> -> vector<8x128xf32>
    %9 = arith.addf %5, %8 : vector<8x128xf32>
    %c2 = arith.constant 2 : index
    %c0_9 = arith.constant 0 : index
    %c0_10 = arith.constant 0 : index
    %10 = vector.load %arg4[%c2, %c0_9, %c0_10] : memref<3x8x128xf32, #tpu.memory_space<vmem>>, vector<1x8x128xf32>
    %11 = vector.shape_cast %10 : vector<1x8x128xf32> to vector<8x128xf32>
    %cst_11 = arith.constant dense<0.000000e+00> : vector<8x128xf32>
    %12 = tpu.matmul %11, %2, %cst_11 {dimension_numbers = #tpu.dot_dimension_numbers<[1], [1], [0], [0], [0, 0, 1, 0], [], []>} : vector<8x128xf32>, vector<128x128xf32>, vector<8x128xf32> -> vector<8x128xf32>
    %13 = arith.addf %9, %12 : vector<8x128xf32>
    %14 = vector.extract_strided_slice %13 {offsets = [0, 0], sizes = [4, 128], strides = [1, 1]} : vector<8x128xf32> to vector<4x128xf32>
    %c0_12 = arith.constant 0 : index
    %15 = memref.load %arg5[%c0_12] : memref<1xf32, #tpu.memory_space<smem>>
    %16 = vector.broadcast %15 : f32 to vector<4x128xf32>
    %17 = arith.addf %14, %16 : vector<4x128xf32>
    %c0_13 = arith.constant 0 : index
    %c0_14 = arith.constant 0 : index
    %c0_15 = arith.constant 0 : index
    %18 = vector.load %arg3[%c0_13, %c0_14, %c0_15] : memref<1x4x128xf32, #tpu.memory_space<vmem>>, vector<1x4x128xf32>
    %19 = vector.shape_cast %18 : vector<1x4x128xf32> to vector<4x128xf32>
    %cst_16 = arith.constant 1.000000e+00 : f32
    %20 = vector.broadcast %cst_16 : f32 to vector<4x128xf32>
    %21 = arith.subf %20, %19 : vector<4x128xf32>
    %cst_17 = arith.constant -1.000000e+30 : f32
    %22 = vector.broadcast %cst_17 : f32 to vector<4x128xf32>
    %23 = arith.mulf %21, %22 : vector<4x128xf32>
    %24 = arith.addf %17, %23 : vector<4x128xf32>
    %25 = vector.shape_cast %24 : vector<4x128xf32> to vector<1x4x128xf32>
    %c0_18 = arith.constant 0 : index
    %c0_19 = arith.constant 0 : index
    %c0_20 = arith.constant 0 : index
    %26 = vector.load %arg6[%c0_18, %c0_19, %c0_20] : memref<1x4x128xf32, #tpu.memory_space<vmem>>, vector<1x4x128xf32>
    tpu.vector_store %arg6[%c0_18, %c0_19, %c0_20], %25 {strides = array<i32>} : memref<1x4x128xf32, #tpu.memory_space<vmem>>, vector<1x4x128xf32>,
    return
  }
  func.func @transform_0(%arg0: i32) -> (i32, i32) {
    %c0_i32 = arith.constant 0 : i32
    %c0_i32_0 = arith.constant 0 : i32
    return %arg0, %c0_i32 : i32, i32
  }
  func.func @transform_1(%arg0: i32) -> (i32, i32) {
    %c0_i32 = arith.constant 0 : i32
    %c0_i32_0 = arith.constant 0 : i32
    return %arg0, %c0_i32 : i32, i32
  }
  func.func @transform_2(%arg0: i32) -> (i32, i32, i32) {
    %c0_i32 = arith.constant 0 : i32
    %c0_i32_0 = arith.constant 0 : i32
    %c0_i32_1 = arith.constant 0 : i32
    return %arg0, %c0_i32, %c0_i32_0 : i32, i32, i32
  }
  func.func @transform_3(%arg0: i32) -> (i32, i32, i32) {
    %c0_i32 = arith.constant 0 : i32
    %c0_i32_0 = arith.constant 0 : i32
    %c0_i32_1 = arith.constant 0 : i32
    %c0_i32_2 = arith.constant 0 : i32
    return %c0_i32, %c0_i32_0, %c0_i32_1 : i32, i32, i32
  }
  func.func @transform_4(%arg0: i32) -> i32 {
    %c0_i32 = arith.constant 0 : i32
    %c0_i32_0 = arith.constant 0 : i32
    return %c0_i32 : i32
  }
  func.func @transform_5(%arg0: i32) -> (i32, i32, i32) {
    %c0_i32 = arith.constant 0 : i32
    %c0_i32_0 = arith.constant 0 : i32
    %c0_i32_1 = arith.constant 0 : i32
    return %arg0, %c0_i32, %c0_i32_0 : i32, i32, i32
  }
}

</mosaic_0001>

<bundles_post_ra>
// kernel: tpu_custom_call.1
= control target key start
LH: loop header
LB: loop body
LE: loop exit
PB: predicated region body
PF: predicated region fallthrough
CT: control target
= control target key end

     0   :  { %11 = vsyncpa [#allocation4], 0  ;;  %s414_s0 = inlined_call_operand.hbm [shape: f32[75,128], index: 0, kind: input, shape index: {}]   ;;  %s415_s1 = inlined_call_operand.hbm [shape: f32[75,128], index: 1, kind: input, shape index: {}]   ;;  %s416_s2 = inlined_call_operand.hbm [shape: f32[1,4,128], index: 2, kind: input, shape index: {}]   ;;  %s417_s3 = inlined_call_operand.hbm [shape: f32[3,8,128], index: 3, kind: input, shape index: {}]   ;;  %s418_s4 = inlined_call_operand.<no memory space> [shape: f32[1], index: 4, kind: input, shape index: {}]   ;;  %s419_s5 = inlined_call_operand.hbm [shape: f32[1,4,128], index: 5, kind: output, shape index: {}]  }
   0x1   :  { %12 = vsyncpa [#allocation7], 0 }
   0x2   :  { %13 = vsyncpa [#allocation10], 0 }
   0x3   :  { %14 = vsyncpa [#allocation5], 0 }
   0x4   :  { %18 = vsyncadd [#allocation4], 768  ;;  %s19_s20 = sshll.u32 %s414_s0, 4  ;;  %s359_s21 = smov [#allocation3]   ;;  %s20_s20 = int_to_ptr.hbm [resolvable:$true] %s19_s20 }
   0x5   :  { %s21_s22 = sshll.u32 %s359_s21, 4  ;;  %s360_s23 = smov 128   ;;  %s22_s22 = int_to_ptr.vmem [resolvable:$true] %s21_s22 }
   0x6   :  { %s361_s24 = smov 8  }
   0x7   :  { %27 = dma.hbm_to_vmem [thread:$0]  %s20_s20, 1280, %s22_s22, [#allocation4], %s360_s23, %s360_s23, %s361_s24  }
   0x8   :  { %31 = vsyncadd [#allocation7], 768  ;;  %s32_s27 = sshll.u32 %s415_s1, 4  ;;  %s362_s28 = smov [#allocation6]   ;;  %s33_s27 = int_to_ptr.hbm [resolvable:$true] %s32_s27 }
   0x9   :  { %s34_s29 = sshll.u32 %s362_s28, 4  ;;  %s46_s0 = sshll.u32 %s416_s2, 4  ;;  %s35_s29 = int_to_ptr.vmem [resolvable:$true] %s34_s29  ;;  %s47_s0 = int_to_ptr.hbm [resolvable:$true] %s46_s0 }
   0xa   :  { %40 = dma.hbm_to_vmem [thread:$0]  %s33_s27, 1280, %s35_s29, [#allocation7], %s360_s23, %s360_s23, %s361_s24  }
   0xb   :  { %s363_s7 = smov [#allocation8]   ;;  %s56_s11 = sshll.u32 %s417_s3, 4  ;;  %s57_s11 = int_to_ptr.hbm [resolvable:$true] %s56_s11 }
   0xc   :  { %s48_s8 = sshll.u32 %s363_s7, 4  ;;  %s364_s1 = smov [#allocation9]   ;;  %s49_s8 = int_to_ptr.vmem [resolvable:$true] %s48_s8 }
   0xd   :  { %51 = dma.hbm_to_vmem [thread:$0]  %s47_s0, 64, %s49_s8, [#allocation7]  }
   0xe   :  { %s58_s12 = sshll.u32 %s364_s1, 4  ;;  %s59_s12 = int_to_ptr.vmem [resolvable:$true] %s58_s12 }
   0xf   :  { %64 = dma.hbm_to_vmem [thread:$0]  %s57_s11, 384, %s59_s12, [#allocation10], %s360_s23, %s360_s23, %s361_s24  }
  0x10   :  { %351 = dma.done.wait [#allocation4], 2048  }
  0x11   :  { %352 = vsyncadd [#allocation4], 4294965248 }
  0x12   :  { %353 = dma.done.wait [#allocation7], 2112  }
  0x13   :  { %354 = vsyncadd [#allocation7], 4294965184 }
  0x14   :  { %355 = dma.done.wait [#allocation10], 384  }
  0x15   :  { %356 = vsyncadd [#allocation10], 4294966912  ;;  %v98_v0 = vld [vmem:[#allocation3 + $0x78] sm:$0xff]  ;;  %v97_v2 = vld [vmem:[#allocation3 + $0x70] sm:$0xff]  ;;  %v198_v57 = vstv %s418_s4  ;;  %s365_s13 = smov [#allocation11]   ;;  %s212_s17 = sshll.u32 %s419_s5, 4  ;;  %s213_s17 = int_to_ptr.hbm [resolvable:$true] %s212_s17 }
  0x16   :  { %v114_v1 = vld [vmem:[#allocation6 + $0x78] sm:$0xff]  ;;  %154 = vmatpush.xpose.msra.mxu1 %v98_v0  ;;  %v113_v4 = vld [vmem:[#allocation6 + $0x70] sm:$0xff]  ;;  %v96_v6 = vld [vmem:[#allocation3 + $0x68] sm:$0xff]  ;;  %s210_s14 = sshll.u32 %s365_s13, 4  ;;  %s211_s14 = int_to_ptr.vmem [resolvable:$true] %s210_s14 }
  0x17   :  { %v130_v3 = vmul.f32 %v114_v1, %v98_v0  ;;  %134 = vmatpush.xpose.msra.mxu0 %v114_v1  ;;  %v129_v5 = vmul.f32 %v113_v4, %v97_v2  ;;  %v112_v7 = vld [vmem:[#allocation6 + $0x68] sm:$0xff]  ;;  %v95_v9 = vld [vmem:[#allocation3 + $0x60] sm:$0xff]  ;;  %v94_v12 = vld [vmem:[#allocation3 + $0x58] sm:$0xff] }
  0x18   :  { %v128_v8 = vmul.f32 %v112_v7, %v96_v6  ;;  %v111_v10 = vld [vmem:[#allocation6 + $0x60] sm:$0xff]  ;;  %v110_v13 = vld [vmem:[#allocation6 + $0x58] sm:$0xff]  ;;  %v93_v15 = vld [vmem:[#allocation3 + $0x50] sm:$0xff] }
  0x19   :  { %176 = vmatpush.xpose.msra.mxu2 %v130_v3  ;;  %v127_v11 = vmul.f32 %v111_v10, %v95_v9  ;;  %v126_v14 = vmul.f32 %v110_v13, %v94_v12  ;;  %v109_v16 = vld [vmem:[#allocation6 + $0x50] sm:$0xff]  ;;  %v92_v18 = vld [vmem:[#allocation3 + $0x48] sm:$0xff]  ;;  %v91_v21 = vld [vmem:[#allocation3 + $0x40] sm:$0xff] }
  0x1a   :  { %155 = vmatpush.xpose.msra.mxu1 %v97_v2  ;;  %v125_v17 = vmul.f32 %v109_v16, %v93_v15  ;;  %v108_v19 = vld [vmem:[#allocation6 + $0x48] sm:$0xff]  ;;  %v107_v22 = vld [vmem:[#allocation6 + $0x40] sm:$0xff]  ;;  %v90_v24 = vld [vmem:[#allocation3 + $0x38] sm:$0xff] }
  0x1b   :  { %135 = vmatpush.xpose.msra.mxu0 %v113_v4  ;;  %v124_v20 = vmul.f32 %v108_v19, %v92_v18  ;;  %v123_v23 = vmul.f32 %v107_v22, %v91_v21  ;;  %v106_v25 = vld [vmem:[#allocation6 + $0x38] sm:$0xff]  ;;  %v89_v27 = vld [vmem:[#allocation3 + $0x30] sm:$0xff]  ;;  %v88_v30 = vld [vmem:[#allocation3 + $0x28] sm:$0xff] }
  0x1c   :  { %v122_v26 = vmul.f32 %v106_v25, %v90_v24  ;;  %v105_v28 = vld [vmem:[#allocation6 + $0x30] sm:$0xff]  ;;  %v104_v31 = vld [vmem:[#allocation6 + $0x28] sm:$0xff]  ;;  %v87_v33 = vld [vmem:[#allocation3 + $0x20] sm:$0xff] }
  0x1d   :  { %177 = vmatpush.xpose.msra.mxu2 %v129_v5  ;;  %v121_v29 = vmul.f32 %v105_v28, %v89_v27  ;;  %v120_v32 = vmul.f32 %v104_v31, %v88_v30  ;;  %v103_v34 = vld [vmem:[#allocation6 + $0x20] sm:$0xff]  ;;  %v86_v36 = vld [vmem:[#allocation3 + $0x18] sm:$0xff]  ;;  %v85_v39 = vld [vmem:[#allocation3 + $0x10] sm:$0xff] }
  0x1e   :  { %156 = vmatpush.xpose.msra.mxu1 %v96_v6  ;;  %v119_v35 = vmul.f32 %v103_v34, %v87_v33  ;;  %v102_v37 = vld [vmem:[#allocation6 + $0x18] sm:$0xff]  ;;  %v101_v40 = vld [vmem:[#allocation6 + $0x10] sm:$0xff]  ;;  %v84_v42 = vld [vmem:[#allocation3 + $0x8] sm:$0xff] }
  0x1f   :  { %136 = vmatpush.xpose.msra.mxu0 %v112_v7  ;;  %v118_v38 = vmul.f32 %v102_v37, %v86_v36  ;;  %v117_v41 = vmul.f32 %v101_v40, %v85_v39  ;;  %v100_v43 = vld [vmem:[#allocation6 + $0x8] sm:$0xff]  ;;  %v83_v45 = vld [vmem:[#allocation3] sm:$0xff]  ;;  %v175_v50 = vld [vmem:[#allocation9 + $0x10] sm:$0xff] }
  0x20   :  { %v116_v44 = vmul.f32 %v100_v43, %v84_v42  ;;  %v99_v46 = vld [vmem:[#allocation6] sm:$0xff]  ;;  %v133_v48 = vld [vmem:[#allocation9 + $0x8] sm:$0xff] }
  0x21   :  { %178 = vmatpush.xpose.msra.mxu2 %v128_v8  ;;  %v115_v47 = vmul.f32 %v99_v46, %v83_v45  ;;  %v131_v49 = vld [vmem:[#allocation9] sm:$0xff]  ;;  %v200_v53 = vld [vmem:[#allocation8] sm:$0xf] }
  0x22   :  { %157 = vmatpush.xpose.msra.mxu1 %v95_v9  ;;  %v201_v55 = vsub.f32 1.0, %v200_v53 }
  0x23   :  { %137 = vmatpush.xpose.msra.mxu0 %v111_v10 }
  0x24   :  { %v202_v59 = vmul.f32 -1e+30, %v201_v55 }
  0x25   :  { %179 = vmatpush.xpose.msra.mxu2 %v127_v11 }
  0x26   :  { %158 = vmatpush.xpose.msra.mxu1 %v94_v12 }
  0x27   :  { %138 = vmatpush.xpose.msra.mxu0 %v110_v13 }
  0x29   :  { %180 = vmatpush.xpose.msra.mxu2 %v126_v14 }
  0x2a   :  { %159 = vmatpush.xpose.msra.mxu1 %v93_v15 }
  0x2b   :  { %139 = vmatpush.xpose.msra.mxu0 %v109_v16 }
  0x2d   :  { %181 = vmatpush.xpose.msra.mxu2 %v125_v17 }
  0x2e   :  { %160 = vmatpush.xpose.msra.mxu1 %v92_v18 }
  0x2f   :  { %140 = vmatpush.xpose.msra.mxu0 %v108_v19 }
  0x31   :  { %182 = vmatpush.xpose.msra.mxu2 %v124_v20 }
  0x32   :  { %161 = vmatpush.xpose.msra.mxu1 %v91_v21 }
  0x33   :  { %141 = vmatpush.xpose.msra.mxu0 %v107_v22 }
  0x35   :  { %183 = vmatpush.xpose.msra.mxu2 %v123_v23 }
  0x36   :  { %162 = vmatpush.xpose.msra.mxu1 %v90_v24 }
  0x37   :  { %142 = vmatpush.xpose.msra.mxu0 %v106_v25 }
  0x39   :  { %184 = vmatpush.xpose.msra.mxu2 %v122_v26 }
  0x3a   :  { %163 = vmatpush.xpose.msra.mxu1 %v89_v27 }
  0x3b   :  { %143 = vmatpush.xpose.msra.mxu0 %v105_v28 }
  0x3d   :  { %185 = vmatpush.xpose.msra.mxu2 %v121_v29 }
  0x3e   :  { %164 = vmatpush.xpose.msra.mxu1 %v88_v30 }
  0x3f   :  { %144 = vmatpush.xpose.msra.mxu0 %v104_v31 }
  0x41   :  { %186 = vmatpush.xpose.msra.mxu2 %v120_v32 }
  0x42   :  { %165 = vmatpush.xpose.msra.mxu1 %v87_v33 }
  0x43   :  { %145 = vmatpush.xpose.msra.mxu0 %v103_v34 }
  0x45   :  { %187 = vmatpush.xpose.msra.mxu2 %v119_v35 }
  0x46   :  { %166 = vmatpush.xpose.msra.mxu1 %v86_v36 }
  0x47   :  { %146 = vmatpush.xpose.msra.mxu0 %v102_v37 }
  0x49   :  { %188 = vmatpush.xpose.msra.mxu2 %v118_v38 }
  0x4a   :  { %167 = vmatpush.xpose.msra.mxu1 %v85_v39 }
  0x4b   :  { %147 = vmatpush.xpose.msra.mxu0 %v101_v40 }
  0x4d   :  { %189 = vmatpush.xpose.msra.mxu2 %v117_v41 }
  0x4e   :  { %168 = vmatpush.xpose.msra.mxu1 %v84_v42 }
  0x4f   :  { %148 = vmatpush.xpose.msra.mxu0 %v100_v43 }
  0x51   :  { %190 = vmatpush.xpose.msra.mxu2 %v116_v44 }
  0x52   :  { %169 = vmatpush.xpose.msra.mxu1 %v83_v45 }
  0x53   :  { %149 = vmatpush.xpose.msra.mxu0 %v99_v46 }
  0x55   :  { %191 = vmatpush.xpose.msra.mxu2 %v115_v47  ;;  %170 = vmatmul.f32.vlgmr.msra.gmra.mxu1 %v131_v49 }
  0x56   :  { %150 = vmatmul.f32.vlgmr.msra.gmra.mxu0 %v133_v48 }
  0x58   :  { %192 = vmatmul.f32.vlgmr.msra.gmra.mxu2 %v175_v50 }
  0xd2   :  { %v171_v52 = vpop.f32.mrf.mxu1 }
  0xd3   :  { %v151_v51 = vpop.f32.mrf.mxu0 }
  0xd4   :  { %v172_v54 = vadd.f32 %v171_v52, %v151_v51 }
  0xdb   :  { %v193_v56 = vpop.f32.mrf.mxu2 }
  0xdc   :  { %v196_v58 = vadd.f32 %v193_v56, %v172_v54 }
  0xde   :  { %v199_v60 = vadd.f32 %v198_v57, %v196_v58 }
  0xe0   :  { %v203_v61 = vadd.f32 %v202_v59, %v199_v60 }
  0xe2   :  { %204 = vst [vmem:[#allocation11] sm:$0xf] %v203_v61 }
  0xe3   :  { %215 = dma.vmem_to_hbm [thread:$0]  %s211_s14, 64, %s213_s17, [#allocation5]  }
  0xe4   :  { %357 = dma.done.wait [#allocation5], 64  }
  0xe5   :  { %358 = vsyncadd [#allocation5], 4294967232 }
  0xe6   :  { %220 = vsyncpa [#allocation4], 1 }
  0xe7   :  { %221 = vsyncpa [#allocation7], 1 }
  0xe8   :  { %222 = vsyncpa [#allocation10], 1 }
  0xe9   :  { %223 = vsyncpa [#allocation5], 1 }

</bundles_post_ra>
